<compile_context>
chip_gen: v7x
topology: tpu7x:2x2x1
jax: 0.10.0
libtpu: 0.0.40
codegen_flags: <defaults>
</compile_context>

<pallas_src>
import functools
from typing import Optional

import jax
import jax.numpy as jnp
import numpy as np
from jax.experimental import pallas as pl
from jax.experimental.pallas import tpu as pltpu


def make_divisible(value: float, divisor: int, min_value: Optional[float] = None,
                   round_down_protect: bool = True) -> int:
    if min_value is None:
        min_value = divisor
    new_value = max(min_value, int(value + divisor / 2) // divisor * divisor)
    if round_down_protect and new_value < 0.9 * value:
        new_value += divisor
    return int(new_value)


# ----------------------------------------------------------------------------
# Fused kernel: the whole C3k2_UIB forward for one batch element per grid step
# ----------------------------------------------------------------------------
def _fused_kernel(use_shortcut, H, W, lpad,
                  x_ref, w1_ref, b1_ref, w2_ref, b2_ref,
                  wp1_ref, bp1_ref, wdw_ref, bdw_ref, wp2_ref, bp2_ref,
                  w3m_ref, w3y_ref, b3_ref,
                  o_ref, scr_ref):
    M = H * W
    f32 = jnp.float32
    dot = functools.partial(jnp.dot, preferred_element_type=f32,
                            precision=jax.lax.Precision.HIGHEST)

    def silu(v):
        return v * jax.nn.sigmoid(v)

    def pw(w_ref, b_ref, v, act):
        y = dot(w_ref[...], v) + b_ref[...]        # 1x1 conv + folded-BN bias
        return silu(y) if act else y

    x = x_ref[0]                                    # (C1, M), lane-dense

    # cv1 / cv2: 1x1 Conv + BN + SiLU
    y1 = pw(w1_ref, b1_ref, x, True)                # (c_, M)
    y2 = pw(w2_ref, b2_ref, x, True)                # (c_, M)

    # EnhancedUIB pw1: 1x1 Conv + BN + SiLU
    h = pw(wp1_ref, bp1_ref, y1, True)              # (hid, M)

    # EnhancedUIB dw: 3x3 depthwise conv (stride 1, pad 1) + BN, no activation.
    # Write h into a zero-padded scratch row and read the 9 taps as statically
    # shifted slices; the zero halo covers the row borders, two lane masks
    # cover the column borders.
    scr_ref[...] = jnp.zeros(scr_ref.shape, scr_ref.dtype)
    scr_ref[:, lpad:lpad + M] = h                   # vreg-aligned interior

    col = jax.lax.broadcasted_iota(jnp.int32, (1, M), 1) % W
    not_first_col = col > 0
    not_last_col = col < (W - 1)

    acc = jnp.zeros(h.shape, f32)
    for dh in (-1, 0, 1):
        for dc in (-1, 0, 1):
            off = lpad + dh * W + dc
            tap = scr_ref[:, off:off + M]           # (hid, M)
            if dc == -1:
                tap = jnp.where(not_first_col, tap, 0.0)
            elif dc == 1:
                tap = jnp.where(not_last_col, tap, 0.0)
            k = (dh + 1) * 3 + (dc + 1)
            acc = acc + tap * wdw_ref[:, k:k + 1]   # per-channel folded weight
    h_dw = acc + bdw_ref[...]                       # (hid, M)

    # EnhancedUIB pw2: 1x1 Conv + BN, no activation
    m_out = pw(wp2_ref, bp2_ref, h_dw, False)       # (c_, M)

    # cv3( cat(m_out, y2) ) with split weight -> concat never materialized
    y = dot(w3m_ref[...], m_out) + dot(w3y_ref[...], y2) + b3_ref[...]
    y = silu(y)                                     # (c2, M)

    if use_shortcut:
        y = y + x                                   # residual (c1 == c2)

    o_ref[0] = y.astype(o_ref.dtype)


def c3k2_uib_forward(x_nchw, params, shortcut=True):
    """x_nchw: (B, C1, H, W) float32 -> (B, C2, H, W) float32."""
    B, C1, H, W = x_nchw.shape
    M = H * W

    w1, b1 = params["cv1"]
    w2, b2 = params["cv2"]
    wp1, bp1 = params["m_pw1"]
    wdw, bdw = params["m_dw"]
    wp2, bp2 = params["m_pw2"]
    w3m, w3y, b3 = params["cv3"]

    c2 = w3m.shape[0]
    hid = wp1.shape[0]
    use_shortcut = bool(shortcut) and (C1 == c2)

    # NCHW -> (B, C, H*W): a free contiguous reshape, no transpose needed.
    x_flat = x_nchw.reshape(B, C1, M)

    # Zero-halo size for the depthwise scratch: >= W + 1, rounded up to a full
    # 128-lane vreg so the interior write stays vreg-aligned.
    lpad = ((W + 1 + 127) // 128) * 128

    consts = (w1, b1, w2, b2, wp1, bp1, wdw, bdw, wp2, bp2, w3m, w3y, b3)
    const_specs = [pl.BlockSpec(a.shape, lambda b: (0, 0)) for a in consts]

    out = pl.pallas_call(
        functools.partial(_fused_kernel, use_shortcut, H, W, lpad),
        out_shape=jax.ShapeDtypeStruct((B, c2, M), jnp.float32),
        grid=(B,),
        in_specs=[pl.BlockSpec((1, C1, M), lambda b: (b, 0, 0))] + const_specs,
        out_specs=pl.BlockSpec((1, c2, M), lambda b: (b, 0, 0)),
        scratch_shapes=[pltpu.VMEM((hid, 2 * lpad + M), jnp.float32)],
        compiler_params=pltpu.CompilerParams(
            dimension_semantics=("parallel",)),
    )(x_flat, *consts)

    return out.reshape(B, c2, H, W)


# ----------------------------------------------------------------------------
# Parameter construction (deterministic, synthetic), BN folded into weights
# ----------------------------------------------------------------------------
def _conv_bn_params(key, cin, cout, dw=False, eps=1e-5):
    k1, k2, k3, k4, k5 = jax.random.split(key, 5)
    if dw:
        w = jax.random.normal(k1, (cout, 3, 3), jnp.float32) * 0.1
    else:
        w = jax.random.normal(k1, (cout, cin), jnp.float32) * 0.1
    gamma = jax.random.uniform(k2, (cout,), jnp.float32, 0.5, 1.5)
    beta = jax.random.normal(k3, (cout,), jnp.float32) * 0.1
    mean = jax.random.normal(k4, (cout,), jnp.float32) * 0.1
    var = jax.random.uniform(k5, (cout,), jnp.float32, 0.5, 1.5)
    scale = gamma / jnp.sqrt(var + eps)
    bias = (beta - mean * scale).reshape(cout, 1)
    if dw:
        w_folded = (w * scale[:, None, None]).reshape(cout, 9)
    else:
        w_folded = w * scale[:, None]
    return w_folded, bias


def make_params(key, c1, c2, e=0.5):
    c_ = int(c2 * e)
    hidden = make_divisible(c_ * 2, 8)              # EnhancedUIB(expand_ratio=2)
    keys = jax.random.split(key, 6)
    w3, b3 = _conv_bn_params(keys[5], 2 * c_, c2)
    return {
        "cv1": _conv_bn_params(keys[0], c1, c_),
        "cv2": _conv_bn_params(keys[1], c1, c_),
        "m_pw1": _conv_bn_params(keys[2], c_, hidden),
        "m_dw": _conv_bn_params(keys[3], hidden, hidden, dw=True),
        "m_pw2": _conv_bn_params(keys[4], hidden, c_),
        # cv3 weight split along its input channels: [m-branch | y2-branch]
        "cv3": (w3[:, :c_], w3[:, c_:], b3),
    }


# ----------------------------------------------------------------------------
# Pure NumPy (float64) reference of the same folded-BN forward
# ----------------------------------------------------------------------------
def _np_silu(v):
    return v / (1.0 + np.exp(-v))


def reference_forward(x_nchw, params, shortcut=True):
    f = lambda a: np.asarray(a, np.float64)
    w1, b1 = map(f, params["cv1"])
    w2, b2 = map(f, params["cv2"])
    wp1, bp1 = map(f, params["m_pw1"])
    wdw, bdw = map(f, params["m_dw"])
    wp2, bp2 = map(f, params["m_pw2"])
    w3m, w3y, b3 = map(f, params["cv3"])

    B, C1, H, W = x_nchw.shape
    x = f(x_nchw).reshape(B, C1, H * W)

    def pw(w, b, v, act):
        y = np.einsum("oc,bcm->bom", w, v) + b[None]
        return _np_silu(y) if act else y

    y1 = pw(w1, b1, x, True)
    y2 = pw(w2, b2, x, True)
    h = pw(wp1, bp1, y1, True)

    hid = h.shape[1]
    h_img = h.reshape(B, hid, H, W)
    h_pad = np.pad(h_img, ((0, 0), (0, 0), (1, 1), (1, 1)))
    wk = wdw.reshape(hid, 3, 3)
    acc = np.zeros_like(h_img)
    for ka in range(3):
        for kb in range(3):
            acc = acc + h_pad[:, :, ka:ka + H, kb:kb + W] * wk[None, :, ka, kb, None, None]
    h_dw = acc.reshape(B, hid, H * W) + bdw[None]

    m_out = pw(wp2, bp2, h_dw, False)
    y = (np.einsum("oc,bcm->bom", w3m, m_out)
         + np.einsum("oc,bcm->bom", w3y, y2) + b3[None])
    y = _np_silu(y)
    if shortcut and C1 == w3m.shape[0]:
        y = y + x
    return y.reshape(B, -1, H, W)


if __name__ == "__main__":
    key = jax.random.PRNGKey(0)
    kp, kx = jax.random.split(key)

    c1 = c2 = 8                       # shortcut path requires c1 == c2
    B, H, W = 2, 16, 16
    params = make_params(kp, c1, c2, e=0.5)

    x = jax.random.normal(kx, (B, c1, H, W), jnp.float32)

    fwd = jax.jit(functools.partial(c3k2_uib_forward, shortcut=True))
    out = jax.block_until_ready(fwd(x, params))

    assert out.shape == (B, c2, H, W)
    assert out.dtype == jnp.float32

    ref = reference_forward(np.asarray(x), params, shortcut=True)
    np.testing.assert_allclose(np.asarray(out), ref, rtol=2e-3, atol=2e-3)

    print("KERNEL_OK")
</pallas_src>

<mosaic_0001>
module attributes {stable_mosaic.version = 11 : i64} {
  func.func @_fused_kernel(%arg0: i32, %arg1: memref<1x8x256xf32, #tpu.memory_space<vmem>>, %arg2: memref<4x8xf32, #tpu.memory_space<vmem>>, %arg3: memref<4x1xf32, #tpu.memory_space<vmem>>, %arg4: memref<4x8xf32, #tpu.memory_space<vmem>>, %arg5: memref<4x1xf32, #tpu.memory_space<vmem>>, %arg6: memref<8x4xf32, #tpu.memory_space<vmem>>, %arg7: memref<8x1xf32, #tpu.memory_space<vmem>>, %arg8: memref<8x9xf32, #tpu.memory_space<vmem>>, %arg9: memref<8x1xf32, #tpu.memory_space<vmem>>, %arg10: memref<4x8xf32, #tpu.memory_space<vmem>>, %arg11: memref<4x1xf32, #tpu.memory_space<vmem>>, %arg12: memref<8x4xf32, #tpu.memory_space<vmem>>, %arg13: memref<8x4xf32, #tpu.memory_space<vmem>>, %arg14: memref<8x1xf32, #tpu.memory_space<vmem>>, %arg15: memref<1x8x256xf32, #tpu.memory_space<vmem>>, %arg16: memref<8x512xf32, #tpu.memory_space<vmem>>) attributes {dimension_semantics = [#tpu.dimension_semantics<parallel>], iteration_bounds = array<i64: 2>, scalar_prefetch = 0 : i64, scratch_operands = 1 : i64, tpu.core_type = #tpu.core_type<tc>, window_params = [{transform_indices = @transform_0, window_bounds = array<i64: 1, 8, 256>}, {pipeline_mode = #tpu.pipeline_mode<synchronous>, transform_indices = @transform_1, window_bounds = array<i64: 4, 8>}, {pipeline_mode = #tpu.pipeline_mode<synchronous>, transform_indices = @transform_2, window_bounds = array<i64: 4, 1>}, {pipeline_mode = #tpu.pipeline_mode<synchronous>, transform_indices = @transform_3, window_bounds = array<i64: 4, 8>}, {pipeline_mode = #tpu.pipeline_mode<synchronous>, transform_indices = @transform_4, window_bounds = array<i64: 4, 1>}, {pipeline_mode = #tpu.pipeline_mode<synchronous>, transform_indices = @transform_5, window_bounds = array<i64: 8, 4>}, {pipeline_mode = #tpu.pipeline_mode<synchronous>, transform_indices = @transform_6, window_bounds = array<i64: 8, 1>}, {pipeline_mode = #tpu.pipeline_mode<synchronous>, transform_indices = @transform_7, window_bounds = array<i64: 8, 9>}, {pipeline_mode = #tpu.pipeline_mode<synchronous>, transform_indices = @transform_8, window_bounds = array<i64: 8, 1>}, {pipeline_mode = #tpu.pipeline_mode<synchronous>, transform_indices = @transform_9, window_bounds = array<i64: 4, 8>}, {pipeline_mode = #tpu.pipeline_mode<synchronous>, transform_indices = @transform_10, window_bounds = array<i64: 4, 1>}, {pipeline_mode = #tpu.pipeline_mode<synchronous>, transform_indices = @transform_11, window_bounds = array<i64: 8, 4>}, {pipeline_mode = #tpu.pipeline_mode<synchronous>, transform_indices = @transform_12, window_bounds = array<i64: 8, 4>}, {pipeline_mode = #tpu.pipeline_mode<synchronous>, transform_indices = @transform_13, window_bounds = array<i64: 8, 1>}, {transform_indices = @transform_14, window_bounds = array<i64: 1, 8, 256>}]} {
    %c0 = arith.constant 0 : index
    %c0_0 = arith.constant 0 : index
    %c0_1 = arith.constant 0 : index
    %0 = vector.load %arg1[%c0, %c0_0, %c0_1] : memref<1x8x256xf32, #tpu.memory_space<vmem>>, vector<1x8x256xf32>
    %1 = vector.shape_cast %0 : vector<1x8x256xf32> to vector<8x256xf32>
    %c0_2 = arith.constant 0 : index
    %c0_3 = arith.constant 0 : index
    %2 = vector.load %arg2[%c0_2, %c0_3] : memref<4x8xf32, #tpu.memory_space<vmem>>, vector<4x8xf32>
    %cst = arith.constant dense<0.000000e+00> : vector<4x256xf32>
    %3 = tpu.matmul %2, %1, %cst {dimension_numbers = #tpu.dot_dimension_numbers<[1], [0], [0], [1], [0, 0, 1, 1], [], []>, precision = #tpu.contract_precision<fp32>} : vector<4x8xf32>, vector<8x256xf32>, vector<4x256xf32> -> vector<4x256xf32>
    %c0_4 = arith.constant 0 : index
    %c0_5 = arith.constant 0 : index
    %4 = vector.load %arg3[%c0_4, %c0_5] : memref<4x1xf32, #tpu.memory_space<vmem>>, vector<4x1xf32>
    %5 = vector.broadcast %4 : vector<4x1xf32> to vector<4x256xf32>
    %6 = arith.addf %3, %5 : vector<4x256xf32>
    %7 = arith.negf %6 : vector<4x256xf32>
    %8 = math.exp %7 : vector<4x256xf32>
    %cst_6 = arith.constant 1.000000e+00 : f32
    %9 = vector.broadcast %cst_6 : f32 to vector<4x256xf32>
    %10 = arith.addf %9, %8 : vector<4x256xf32>
    %11 = arith.divf %9, %10 : vector<4x256xf32>
    %12 = arith.mulf %6, %11 : vector<4x256xf32>
    %c0_7 = arith.constant 0 : index
    %c0_8 = arith.constant 0 : index
    %13 = vector.load %arg4[%c0_7, %c0_8] : memref<4x8xf32, #tpu.memory_space<vmem>>, vector<4x8xf32>
    %cst_9 = arith.constant dense<0.000000e+00> : vector<4x256xf32>
    %14 = tpu.matmul %13, %1, %cst_9 {dimension_numbers = #tpu.dot_dimension_numbers<[1], [0], [0], [1], [0, 0, 1, 1], [], []>, precision = #tpu.contract_precision<fp32>} : vector<4x8xf32>, vector<8x256xf32>, vector<4x256xf32> -> vector<4x256xf32>
    %c0_10 = arith.constant 0 : index
    %c0_11 = arith.constant 0 : index
    %15 = vector.load %arg5[%c0_10, %c0_11] : memref<4x1xf32, #tpu.memory_space<vmem>>, vector<4x1xf32>
    %16 = vector.broadcast %15 : vector<4x1xf32> to vector<4x256xf32>
    %17 = arith.addf %14, %16 : vector<4x256xf32>
    %18 = arith.negf %17 : vector<4x256xf32>
    %19 = math.exp %18 : vector<4x256xf32>
    %cst_12 = arith.constant 1.000000e+00 : f32
    %20 = vector.broadcast %cst_12 : f32 to vector<4x256xf32>
    %21 = arith.addf %20, %19 : vector<4x256xf32>
    %22 = arith.divf %20, %21 : vector<4x256xf32>
    %23 = arith.mulf %17, %22 : vector<4x256xf32>
    %c0_13 = arith.constant 0 : index
    %c0_14 = arith.constant 0 : index
    %24 = vector.load %arg6[%c0_13, %c0_14] : memref<8x4xf32, #tpu.memory_space<vmem>>, vector<8x4xf32>
    %cst_15 = arith.constant dense<0.000000e+00> : vector<8x256xf32>
    %25 = tpu.matmul %24, %12, %cst_15 {dimension_numbers = #tpu.dot_dimension_numbers<[1], [0], [0], [1], [0, 0, 1, 1], [], []>, precision = #tpu.contract_precision<fp32>} : vector<8x4xf32>, vector<4x256xf32>, vector<8x256xf32> -> vector<8x256xf32>
    %c0_16 = arith.constant 0 : index
    %c0_17 = arith.constant 0 : index
    %26 = vector.load %arg7[%c0_16, %c0_17] : memref<8x1xf32, #tpu.memory_space<vmem>>, vector<8x1xf32>
    %27 = vector.broadcast %26 : vector<8x1xf32> to vector<8x256xf32>
    %28 = arith.addf %25, %27 : vector<8x256xf32>
    %29 = arith.negf %28 : vector<8x256xf32>
    %30 = math.exp %29 : vector<8x256xf32>
    %cst_18 = arith.constant 1.000000e+00 : f32
    %31 = vector.broadcast %cst_18 : f32 to vector<8x256xf32>
    %32 = arith.addf %31, %30 : vector<8x256xf32>
    %33 = arith.divf %31, %32 : vector<8x256xf32>
    %34 = arith.mulf %28, %33 : vector<8x256xf32>
    %cst_19 = arith.constant 0.000000e+00 : f32
    %35 = vector.broadcast %cst_19 : f32 to vector<8x512xf32>
    %c0_20 = arith.constant 0 : index
    %c0_21 = arith.constant 0 : index
    %36 = vector.load %arg16[%c0_20, %c0_21] : memref<8x512xf32, #tpu.memory_space<vmem>>, vector<8x512xf32>
    tpu.vector_store %arg16[%c0_20, %c0_21], %35 {strides = array<i32>} : memref<8x512xf32, #tpu.memory_space<vmem>>, vector<8x512xf32>,
    %c0_22 = arith.constant 0 : index
    %c128 = arith.constant 128 : index
    %37 = vector.load %arg16[%c0_22, %c128] : memref<8x512xf32, #tpu.memory_space<vmem>>, vector<8x256xf32>
    tpu.vector_store %arg16[%c0_22, %c128], %34 {strides = array<i32>} : memref<8x512xf32, #tpu.memory_space<vmem>>, vector<8x256xf32>,
    %38 = tpu.iota {dimensions = array<i32: 1>} : vector<1x256xi32>
    %c16_i32 = arith.constant 16 : i32
    %c0_i32 = arith.constant 0 : i32
    %39 = arith.cmpi eq, %c16_i32, %c0_i32 : i32
    %c1_i32 = arith.constant 1 : i32
    %40 = arith.select %39, %c1_i32, %c16_i32 : i32
    %41 = vector.broadcast %40 : i32 to vector<1x256xi32>
    %42 = arith.remsi %38, %41 : vector<1x256xi32>
    %c0_i32_23 = arith.constant 0 : i32
    %43 = vector.broadcast %c0_i32_23 : i32 to vector<1x256xi32>
    %44 = arith.cmpi ne, %42, %43 : vector<1x256xi32>
    %c0_i32_24 = arith.constant 0 : i32
    %45 = vector.broadcast %c0_i32_24 : i32 to vector<1x256xi32>
    %46 = arith.cmpi slt, %42, %45 : vector<1x256xi32>
    %c0_i32_25 = arith.constant 0 : i32
    %47 = arith.cmpi slt, %40, %c0_i32_25 : i32
    %48 = vector.broadcast %47 : i1 to vector<1x256xi1>
    %49 = vector.broadcast %48 : vector<1x256xi1> to vector<1x256xi1>
    %50 = arith.xori %46, %49 : vector<1x256xi1>
    %51 = arith.andi %50, %44 : vector<1x256xi1>
    %52 = vector.broadcast %40 : i32 to vector<1x256xi32>
    %53 = arith.addi %42, %52 : vector<1x256xi32>
    %54 = arith.select %51, %53, %42 : vector<1x256xi1>, vector<1x256xi32>
    %c0_i32_26 = arith.constant 0 : i32
    %55 = vector.broadcast %c0_i32_26 : i32 to vector<1x256xi32>
    %56 = arith.cmpi sgt, %54, %55 : vector<1x256xi32>
    %c15_i32 = arith.constant 15 : i32
    %57 = vector.broadcast %c15_i32 : i32 to vector<1x256xi32>
    %58 = arith.cmpi slt, %54, %57 : vector<1x256xi32>
    %cst_27 = arith.constant 0.000000e+00 : f32
    %59 = vector.broadcast %cst_27 : f32 to vector<8x256xf32>
    %c0_28 = arith.constant 0 : index
    %c111 = arith.constant 111 : index
    %60 = vector.load %arg16[%c0_28, %c111] : memref<8x512xf32, #tpu.memory_space<vmem>>, vector<8x256xf32>
    %cst_29 = arith.constant 0.000000e+00 : f32
    %61 = vector.shape_cast %56 : vector<1x256xi1> to vector<1x256xi1>
    %62 = vector.broadcast %61 : vector<1x256xi1> to vector<8x256xi1>
    %63 = vector.broadcast %cst_29 : f32 to vector<8x256xf32>
    %64 = arith.select %62, %60, %63 : vector<8x256xi1>, vector<8x256xf32>
    %c0_30 = arith.constant 0 : index
    %c0_31 = arith.constant 0 : index
    %65 = vector.load %arg8[%c0_30, %c0_31] : memref<8x9xf32, #tpu.memory_space<vmem>>, vector<8x1xf32>
    %66 = vector.broadcast %65 : vector<8x1xf32> to vector<8x256xf32>
    %67 = arith.mulf %64, %66 : vector<8x256xf32>
    %68 = arith.addf %59, %67 : vector<8x256xf32>
    %c0_32 = arith.constant 0 : index
    %c112 = arith.constant 112 : index
    %69 = vector.load %arg16[%c0_32, %c112] : memref<8x512xf32, #tpu.memory_space<vmem>>, vector<8x256xf32>
    %c0_33 = arith.constant 0 : index
    %c1 = arith.constant 1 : index
    %70 = vector.load %arg8[%c0_33, %c1] : memref<8x9xf32, #tpu.memory_space<vmem>>, vector<8x1xf32>
    %71 = vector.broadcast %70 : vector<8x1xf32> to vector<8x256xf32>
    %72 = arith.mulf %69, %71 : vector<8x256xf32>
    %73 = arith.addf %68, %72 : vector<8x256xf32>
    %c0_34 = arith.constant 0 : index
    %c113 = arith.constant 113 : index
    %74 = vector.load %arg16[%c0_34, %c113] : memref<8x512xf32, #tpu.memory_space<vmem>>, vector<8x256xf32>
    %cst_35 = arith.constant 0.000000e+00 : f32
    %75 = vector.shape_cast %58 : vector<1x256xi1> to vector<1x256xi1>
    %76 = vector.broadcast %75 : vector<1x256xi1> to vector<8x256xi1>
    %77 = vector.broadcast %cst_35 : f32 to vector<8x256xf32>
    %78 = arith.select %76, %74, %77 : vector<8x256xi1>, vector<8x256xf32>
    %c0_36 = arith.constant 0 : index
    %c2 = arith.constant 2 : index
    %79 = vector.load %arg8[%c0_36, %c2] : memref<8x9xf32, #tpu.memory_space<vmem>>, vector<8x1xf32>
    %80 = vector.broadcast %79 : vector<8x1xf32> to vector<8x256xf32>
    %81 = arith.mulf %78, %80 : vector<8x256xf32>
    %82 = arith.addf %73, %81 : vector<8x256xf32>
    %c0_37 = arith.constant 0 : index
    %c127 = arith.constant 127 : index
    %83 = vector.load %arg16[%c0_37, %c127] : memref<8x512xf32, #tpu.memory_space<vmem>>, vector<8x256xf32>
    %cst_38 = arith.constant 0.000000e+00 : f32
    %84 = vector.shape_cast %56 : vector<1x256xi1> to vector<1x256xi1>
    %85 = vector.broadcast %84 : vector<1x256xi1> to vector<8x256xi1>
    %86 = vector.broadcast %cst_38 : f32 to vector<8x256xf32>
    %87 = arith.select %85, %83, %86 : vector<8x256xi1>, vector<8x256xf32>
    %c0_39 = arith.constant 0 : index
    %c3 = arith.constant 3 : index
    %88 = vector.load %arg8[%c0_39, %c3] : memref<8x9xf32, #tpu.memory_space<vmem>>, vector<8x1xf32>
    %89 = vector.broadcast %88 : vector<8x1xf32> to vector<8x256xf32>
    %90 = arith.mulf %87, %89 : vector<8x256xf32>
    %91 = arith.addf %82, %90 : vector<8x256xf32>
    %c0_40 = arith.constant 0 : index
    %c128_41 = arith.constant 128 : index
    %92 = vector.load %arg16[%c0_40, %c128_41] : memref<8x512xf32, #tpu.memory_space<vmem>>, vector<8x256xf32>
    %c0_42 = arith.constant 0 : index
    %c4 = arith.constant 4 : index
    %93 = vector.load %arg8[%c0_42, %c4] : memref<8x9xf32, #tpu.memory_space<vmem>>, vector<8x1xf32>
    %94 = vector.broadcast %93 : vector<8x1xf32> to vector<8x256xf32>
    %95 = arith.mulf %92, %94 : vector<8x256xf32>
    %96 = arith.addf %91, %95 : vector<8x256xf32>
    %c0_43 = arith.constant 0 : index
    %c129 = arith.constant 129 : index
    %97 = vector.load %arg16[%c0_43, %c129] : memref<8x512xf32, #tpu.memory_space<vmem>>, vector<8x256xf32>
    %cst_44 = arith.constant 0.000000e+00 : f32
    %98 = vector.shape_cast %58 : vector<1x256xi1> to vector<1x256xi1>
    %99 = vector.broadcast %98 : vector<1x256xi1> to vector<8x256xi1>
    %100 = vector.broadcast %cst_44 : f32 to vector<8x256xf32>
    %101 = arith.select %99, %97, %100 : vector<8x256xi1>, vector<8x256xf32>
    %c0_45 = arith.constant 0 : index
    %c5 = arith.constant 5 : index
    %102 = vector.load %arg8[%c0_45, %c5] : memref<8x9xf32, #tpu.memory_space<vmem>>, vector<8x1xf32>
    %103 = vector.broadcast %102 : vector<8x1xf32> to vector<8x256xf32>
    %104 = arith.mulf %101, %103 : vector<8x256xf32>
    %105 = arith.addf %96, %104 : vector<8x256xf32>
    %c0_46 = arith.constant 0 : index
    %c143 = arith.constant 143 : index
    %106 = vector.load %arg16[%c0_46, %c143] : memref<8x512xf32, #tpu.memory_space<vmem>>, vector<8x256xf32>
    %cst_47 = arith.constant 0.000000e+00 : f32
    %107 = vector.shape_cast %56 : vector<1x256xi1> to vector<1x256xi1>
    %108 = vector.broadcast %107 : vector<1x256xi1> to vector<8x256xi1>
    %109 = vector.broadcast %cst_47 : f32 to vector<8x256xf32>
    %110 = arith.select %108, %106, %109 : vector<8x256xi1>, vector<8x256xf32>
    %c0_48 = arith.constant 0 : index
    %c6 = arith.constant 6 : index
    %111 = vector.load %arg8[%c0_48, %c6] : memref<8x9xf32, #tpu.memory_space<vmem>>, vector<8x1xf32>
    %112 = vector.broadcast %111 : vector<8x1xf32> to vector<8x256xf32>
    %113 = arith.mulf %110, %112 : vector<8x256xf32>
    %114 = arith.addf %105, %113 : vector<8x256xf32>
    %c0_49 = arith.constant 0 : index
    %c144 = arith.constant 144 : index
    %115 = vector.load %arg16[%c0_49, %c144] : memref<8x512xf32, #tpu.memory_space<vmem>>, vector<8x256xf32>
    %c0_50 = arith.constant 0 : index
    %c7 = arith.constant 7 : index
    %116 = vector.load %arg8[%c0_50, %c7] : memref<8x9xf32, #tpu.memory_space<vmem>>, vector<8x1xf32>
    %117 = vector.broadcast %116 : vector<8x1xf32> to vector<8x256xf32>
    %118 = arith.mulf %115, %117 : vector<8x256xf32>
    %119 = arith.addf %114, %118 : vector<8x256xf32>
    %c0_51 = arith.constant 0 : index
    %c145 = arith.constant 145 : index
    %120 = vector.load %arg16[%c0_51, %c145] : memref<8x512xf32, #tpu.memory_space<vmem>>, vector<8x256xf32>
    %cst_52 = arith.constant 0.000000e+00 : f32
    %121 = vector.shape_cast %58 : vector<1x256xi1> to vector<1x256xi1>
    %122 = vector.broadcast %121 : vector<1x256xi1> to vector<8x256xi1>
    %123 = vector.broadcast %cst_52 : f32 to vector<8x256xf32>
    %124 = arith.select %122, %120, %123 : vector<8x256xi1>, vector<8x256xf32>
    %c0_53 = arith.constant 0 : index
    %c8 = arith.constant 8 : index
    %125 = vector.load %arg8[%c0_53, %c8] : memref<8x9xf32, #tpu.memory_space<vmem>>, vector<8x1xf32>
    %126 = vector.broadcast %125 : vector<8x1xf32> to vector<8x256xf32>
    %127 = arith.mulf %124, %126 : vector<8x256xf32>
    %128 = arith.addf %119, %127 : vector<8x256xf32>
    %c0_54 = arith.constant 0 : index
    %c0_55 = arith.constant 0 : index
    %129 = vector.load %arg9[%c0_54, %c0_55] : memref<8x1xf32, #tpu.memory_space<vmem>>, vector<8x1xf32>
    %130 = vector.broadcast %129 : vector<8x1xf32> to vector<8x256xf32>
    %131 = arith.addf %128, %130 : vector<8x256xf32>
    %c0_56 = arith.constant 0 : index
    %c0_57 = arith.constant 0 : index
    %132 = vector.load %arg10[%c0_56, %c0_57] : memref<4x8xf32, #tpu.memory_space<vmem>>, vector<4x8xf32>
    %cst_58 = arith.constant dense<0.000000e+00> : vector<4x256xf32>
    %133 = tpu.matmul %132, %131, %cst_58 {dimension_numbers = #tpu.dot_dimension_numbers<[1], [0], [0], [1], [0, 0, 1, 1], [], []>, precision = #tpu.contract_precision<fp32>} : vector<4x8xf32>, vector<8x256xf32>, vector<4x256xf32> -> vector<4x256xf32>
    %c0_59 = arith.constant 0 : index
    %c0_60 = arith.constant 0 : index
    %134 = vector.load %arg11[%c0_59, %c0_60] : memref<4x1xf32, #tpu.memory_space<vmem>>, vector<4x1xf32>
    %135 = vector.broadcast %134 : vector<4x1xf32> to vector<4x256xf32>
    %136 = arith.addf %133, %135 : vector<4x256xf32>
    %c0_61 = arith.constant 0 : index
    %c0_62 = arith.constant 0 : index
    %137 = vector.load %arg12[%c0_61, %c0_62] : memref<8x4xf32, #tpu.memory_space<vmem>>, vector<8x4xf32>
    %cst_63 = arith.constant dense<0.000000e+00> : vector<8x256xf32>
    %138 = tpu.matmul %137, %136, %cst_63 {dimension_numbers = #tpu.dot_dimension_numbers<[1], [0], [0], [1], [0, 0, 1, 1], [], []>, precision = #tpu.contract_precision<fp32>} : vector<8x4xf32>, vector<4x256xf32>, vector<8x256xf32> -> vector<8x256xf32>
    %c0_64 = arith.constant 0 : index
    %c0_65 = arith.constant 0 : index
    %139 = vector.load %arg13[%c0_64, %c0_65] : memref<8x4xf32, #tpu.memory_space<vmem>>, vector<8x4xf32>
    %cst_66 = arith.constant dense<0.000000e+00> : vector<8x256xf32>
    %140 = tpu.matmul %139, %23, %cst_66 {dimension_numbers = #tpu.dot_dimension_numbers<[1], [0], [0], [1], [0, 0, 1, 1], [], []>, precision = #tpu.contract_precision<fp32>} : vector<8x4xf32>, vector<4x256xf32>, vector<8x256xf32> -> vector<8x256xf32>
    %141 = arith.addf %138, %140 : vector<8x256xf32>
    %c0_67 = arith.constant 0 : index
    %c0_68 = arith.constant 0 : index
    %142 = vector.load %arg14[%c0_67, %c0_68] : memref<8x1xf32, #tpu.memory_space<vmem>>, vector<8x1xf32>
    %143 = vector.broadcast %142 : vector<8x1xf32> to vector<8x256xf32>
    %144 = arith.addf %141, %143 : vector<8x256xf32>
    %145 = arith.negf %144 : vector<8x256xf32>
    %146 = math.exp %145 : vector<8x256xf32>
    %cst_69 = arith.constant 1.000000e+00 : f32
    %147 = vector.broadcast %cst_69 : f32 to vector<8x256xf32>
    %148 = arith.addf %147, %146 : vector<8x256xf32>
    %149 = arith.divf %147, %148 : vector<8x256xf32>
    %150 = arith.mulf %144, %149 : vector<8x256xf32>
    %151 = arith.addf %150, %1 : vector<8x256xf32>
    %c0_70 = arith.constant 0 : index
    %c0_71 = arith.constant 0 : index
    %c0_72 = arith.constant 0 : index
    %152 = vector.load %arg15[%c0_70, %c0_71, %c0_72] : memref<1x8x256xf32, #tpu.memory_space<vmem>>, vector<1x8x256xf32>
    %153 = vector.shape_cast %152 : vector<1x8x256xf32> to vector<8x256xf32>
    %154 = vector.shape_cast %151 : vector<8x256xf32> to vector<1x8x256xf32>
    tpu.vector_store %arg15[%c0_70, %c0_71, %c0_72], %154 {strides = array<i32>} : memref<1x8x256xf32, #tpu.memory_space<vmem>>, vector<1x8x256xf32>,
    return
  }
  func.func @transform_0(%arg0: i32) -> (i32, i32, i32) {
    %c0_i32 = arith.constant 0 : i32
    %c0_i32_0 = arith.constant 0 : i32
    %c0_i32_1 = arith.constant 0 : i32
    return %arg0, %c0_i32, %c0_i32_0 : i32, i32, i32
  }
  func.func @transform_1(%arg0: i32) -> (i32, i32) {
    %c0_i32 = arith.constant 0 : i32
    %c0_i32_0 = arith.constant 0 : i32
    %c0_i32_1 = arith.constant 0 : i32
    return %c0_i32, %c0_i32_0 : i32, i32
  }
  func.func @transform_2(%arg0: i32) -> (i32, i32) {
    %c0_i32 = arith.constant 0 : i32
    %c0_i32_0 = arith.constant 0 : i32
    %c0_i32_1 = arith.constant 0 : i32
    return %c0_i32, %c0_i32_0 : i32, i32
  }
  func.func @transform_3(%arg0: i32) -> (i32, i32) {
    %c0_i32 = arith.constant 0 : i32
    %c0_i32_0 = arith.constant 0 : i32
    %c0_i32_1 = arith.constant 0 : i32
    return %c0_i32, %c0_i32_0 : i32, i32
  }
  func.func @transform_4(%arg0: i32) -> (i32, i32) {
    %c0_i32 = arith.constant 0 : i32
    %c0_i32_0 = arith.constant 0 : i32
    %c0_i32_1 = arith.constant 0 : i32
    return %c0_i32, %c0_i32_0 : i32, i32
  }
  func.func @transform_5(%arg0: i32) -> (i32, i32) {
    %c0_i32 = arith.constant 0 : i32
    %c0_i32_0 = arith.constant 0 : i32
    %c0_i32_1 = arith.constant 0 : i32
    return %c0_i32, %c0_i32_0 : i32, i32
  }
  func.func @transform_6(%arg0: i32) -> (i32, i32) {
    %c0_i32 = arith.constant 0 : i32
    %c0_i32_0 = arith.constant 0 : i32
    %c0_i32_1 = arith.constant 0 : i32
    return %c0_i32, %c0_i32_0 : i32, i32
  }
  func.func @transform_7(%arg0: i32) -> (i32, i32) {
    %c0_i32 = arith.constant 0 : i32
    %c0_i32_0 = arith.constant 0 : i32
    %c0_i32_1 = arith.constant 0 : i32
    return %c0_i32, %c0_i32_0 : i32, i32
  }
  func.func @transform_8(%arg0: i32) -> (i32, i32) {
    %c0_i32 = arith.constant 0 : i32
    %c0_i32_0 = arith.constant 0 : i32
    %c0_i32_1 = arith.constant 0 : i32
    return %c0_i32, %c0_i32_0 : i32, i32
  }
  func.func @transform_9(%arg0: i32) -> (i32, i32) {
    %c0_i32 = arith.constant 0 : i32
    %c0_i32_0 = arith.constant 0 : i32
    %c0_i32_1 = arith.constant 0 : i32
    return %c0_i32, %c0_i32_0 : i32, i32
  }
  func.func @transform_10(%arg0: i32) -> (i32, i32) {
    %c0_i32 = arith.constant 0 : i32
    %c0_i32_0 = arith.constant 0 : i32
    %c0_i32_1 = arith.constant 0 : i32
    return %c0_i32, %c0_i32_0 : i32, i32
  }
  func.func @transform_11(%arg0: i32) -> (i32, i32) {
    %c0_i32 = arith.constant 0 : i32
    %c0_i32_0 = arith.constant 0 : i32
    %c0_i32_1 = arith.constant 0 : i32
    return %c0_i32, %c0_i32_0 : i32, i32
  }
  func.func @transform_12(%arg0: i32) -> (i32, i32) {
    %c0_i32 = arith.constant 0 : i32
    %c0_i32_0 = arith.constant 0 : i32
    %c0_i32_1 = arith.constant 0 : i32
    return %c0_i32, %c0_i32_0 : i32, i32
  }
  func.func @transform_13(%arg0: i32) -> (i32, i32) {
    %c0_i32 = arith.constant 0 : i32
    %c0_i32_0 = arith.constant 0 : i32
    %c0_i32_1 = arith.constant 0 : i32
    return %c0_i32, %c0_i32_0 : i32, i32
  }
  func.func @transform_14(%arg0: i32) -> (i32, i32, i32) {
    %c0_i32 = arith.constant 0 : i32
    %c0_i32_0 = arith.constant 0 : i32
    %c0_i32_1 = arith.constant 0 : i32
    return %arg0, %c0_i32, %c0_i32_0 : i32, i32, i32
  }
}

</mosaic_0001>

<bundles_post_ra>
// kernel: c3k2_uib_forward.1
= control target key start
LH: loop header
LB: loop body
LE: loop exit
PB: predicated region body
PF: predicated region fallthrough
CT: control target
= control target key end

     0   :  { %s3960_s29 = smov 0   ;;  %s4267_s0 = inlined_call_operand.vmem [shape: f32[2,8,256], index: 0, kind: input, shape index: {}]   ;;  %s4268_s1 = inlined_call_operand.vmem [shape: f32[4,8], index: 1, kind: input, shape index: {}]   ;;  %s4269_s2 = inlined_call_operand.vmem [shape: f32[4,1], index: 2, kind: input, shape index: {}]   ;;  %s4270_s3 = inlined_call_operand.vmem [shape: f32[4,8], index: 3, kind: input, shape index: {}]   ;;  %s4271_s4 = inlined_call_operand.vmem [shape: f32[4,1], index: 4, kind: input, shape index: {}]   ;;  %s4272_s5 = inlined_call_operand.vmem [shape: f32[8,4], index: 5, kind: input, shape index: {}]   ;;  %s4273_s6 = inlined_call_operand.vmem [shape: f32[8,1], index: 6, kind: input, shape index: {}]   ;;  %s4274_s7 = inlined_call_operand.vmem [shape: f32[8,9], index: 7, kind: input, shape index: {}]   ;;  %s4275_s8 = inlined_call_operand.vmem [shape: f32[8,1], index: 8, kind: input, shape index: {}]   ;;  %s4276_s9 = inlined_call_operand.vmem [shape: f32[4,8], index: 9, kind: input, shape index: {}]   ;;  %s4277_s10 = inlined_call_operand.vmem [shape: f32[4,1], index: 10, kind: input, shape index: {}]   ;;  %s4278_s11 = inlined_call_operand.vmem [shape: f32[8,4], index: 11, kind: input, shape index: {}]   ;;  %s4279_s12 = inlined_call_operand.vmem [shape: f32[8,4], index: 12, kind: input, shape index: {}]   ;;  %s4280_s13 = inlined_call_operand.vmem [shape: f32[8,1], index: 13, kind: input, shape index: {}]   ;;  %s4281_s14 = inlined_call_operand.vmem [shape: f32[2,8,256], index: 14, kind: output, shape index: {}]  }
   0x1 LB: > { %s3699_s30 = sadd.s32 4294967295, %s3865_s29   ;;  %p3703_p0 = scmp.ge.s32.totalorder %s3865_s29, 1  ;;  %s3865_s29 = sphi %s3960_s29, %s24_s29  }
   0x2   : > { %p412_p1 = scmp.lt.s32.totalorder %s3865_s29, 3 }
   0x4   : > { %p413_p2 = pnand %p3703_p0, %p412_p1 }
   0x5   : > { %p458_p3 = scmp.lt.s32.totalorder (!%p413_p2), %s3699_s30, 1  ;;  %v470_v0 = vld [vmem:[%s4268_s1] sm:$0xf] (!%p413_p2)  ;;  %vm477_vm0 = vcmask (!%p413_p2), 64512   ;;  %v3867_v1 = vmov (!%p413_p2), 0.0   ;;  %v3868_v3 = vmov (!%p413_p2), 0  }
   0x6   : > { %416 = sbr.rel (%p413_p2) target bundleno = 1311 (0x51f), region = 76  ;;  %547 = vmatprep.mubr.f32.mxu1 (!%p413_p2), %v3867_v1  ;;  %v479_v2 = vsel (!%p413_p2), %vm477_vm0, %v470_v0, 0  ;;  %3816 = vset.pattern.permute.xlu0 (!%p413_p2), %v3868_v3  ;;  %v471_v4 = vld [vmem:[%s4269_s2] sm:$0xf] (!%p413_p2)  ;;  %v3869_v24 = vmov (!%p413_p2), 1   ;;  %v3870_v27 = vmov (!%p413_p2), 3  }
   0x7   : > { %v548_v5 = vand.u32 (!%p413_p2), 4294901760, %v479_v2  ;;  %474 = vperm.xlu0 (!%p413_p2), %3816, %v471_v4   ;;  %1533 = vmatprep.mubr.f32.mxu0 (!%p413_p2), %v3867_v1  ;;  %v1450_v6 = vld [vmem:[%s4273_s6] sm:$0xff] (!%p413_p2)  ;;  %v3871_v30 = vmov (!%p413_p2), 7   ;;  %s3872_s15 = smov (!%p413_p2), 17   ;;  %v3873_v33 = vmov (!%p413_p2), 2   ;;  %v3874_v35 = vmov (!%p413_p2), 4  }
   0x8   : > { %v4033_v23 = vld [vmem:[%s4274_s7] sm:$0xff] (!%p413_p2)  ;;  %3817 = vset.pattern.permute.xlu1 (!%p413_p2), %v3869_v24  ;;  %v3875_v36 = vmov (!%p413_p2), 5   ;;  %vm1456_vm1 = vcmask (!%p413_p2), 31744   ;;  %vm1460_vm2 = vcmask (!%p413_p2), 1043456   ;;  %s3876_s18 = smov (!%p413_p2), 15   ;;  %s3877_s19 = smov (!%p413_p2), 1  }
   0x9   : > { %v549_v7 = vsub.f32 (!%p413_p2), %v479_v2, %v548_v5  ;;  %v960_v25 = vld [vmem:[%s4270_s3] sm:$0xf] (!%p413_p2)  ;;  %2017 = vperm.xlu1 (!%p413_p2), %3817, %v4033_v23   ;;  %s3879_s20 = smov (!%p413_p2), 127   ;;  %s3881_s22 = smov (!%p413_p2), 113   ;;  %vm1999_vm3 = vcmask (!%p413_p2), 138240   ;;  %vm2032_vm5 = vcmask (!%p413_p2), 130048  }
   0xa   : > { %v968_v26 = vsel (!%p413_p2), %vm477_vm0, %v960_v25, 0  ;;  %v1449_v44 = vld [vmem:[%s4272_s5] sm:$0xff] (!%p413_p2)  ;;  %s3882_s23 = smov (!%p413_p2), 16   ;;  %s3883_s26 = smov (!%p413_p2), 111   ;;  %vm2049_vm6 = vcmask (!%p413_p2), 121856   ;;  %vm2070_vm9 = vcmask (!%p413_p2), 7168  }
   0xb   : > { %v550_v10 = vand.u32 (!%p413_p2), 4294901760, %v549_v7  ;;  %1453 = vperm.xlu0 (!%p413_p2), %3816, %v1450_v6   ;;  %v1037_v28 = vand.u32 (!%p413_p2), 4294901760, %v968_v26  ;;  %v1458_v45 = vsel (!%p413_p2), %vm1456_vm1, %v1449_v44, 0  ;;  %s3884_s27 = smov (!%p413_p2), 112   ;;  %vm2105_vm11 = vcmask (!%p413_p2), 1039360  }
   0xc   : > { %v1534_v50 = vand.u32 (!%p413_p2), 4294901760, %v1458_v45  ;;  %vm2126_vm12 = vcmask (!%p413_p2), 924672   ;;  %vm2170_vm13 = vcmask (!%p413_p2), 908288   ;;  %vm2157_vm14 = vcmask (!%p413_p2), 916480  }
   0xd   : > { %s4291_s30 = smov (!%p458_p3, %s3699_s30), 1  ;;  %v551_v13 = vsub.f32 %v549_v7, %v550_v10  ;;  %v1038_v29 = vsub.f32 %v968_v26, %v1037_v28  ;;  %3818 = vset.pattern.permute.xlu1 %v3871_v30 }
   0xe   : > { %s3718_s21 = sshll.u32 %s4291_s30, 4  ;;  %2142 = vperm.xlu1 %3818, %v4033_v23   ;;  %v1535_v51 = vsub.f32 %v1458_v45, %v1534_v50 }
   0xf   : > { %s462_s24 = scalar_lea.vmem %s4267_s0, %s3718_s21  ;;  %v552_v16 = vand.u32 4294901760, %v551_v13  ;;  %3820 = vset.pattern.permute.xlu0 %v3870_v27  ;;  %v1039_v31 = vand.u32 4294901760, %v1038_v29 }
  0x10   : > { %v3989_v8 = vld [vmem:[%s462_s24 + $0x8] sm:$0xff]  ;;  %v3991_v9 = vld [vmem:[%s462_s24] sm:$0xff]  ;;  %2078 = vperm.xlu0 %3820, %v4033_v23   ;;  %v1536_v52 = vand.u32 4294901760, %v1535_v51 }
  0x11   : > { %v3994_v11 = vand.u32 4294901760, %v3989_v8  ;;  %v3997_v12 = vand.u32 4294901760, %v3991_v9  ;;  %v1040_v32 = vsub.f32 %v1038_v29, %v1039_v31 }
  0x12   : > { %3819 = vset.pattern.permute.xlu1 %v3873_v33  ;;  %v1537_v56 = vsub.f32 %v1535_v51, %v1536_v52 }
  0x13   : > { %482 = vmatprep.subr.mxu1 %v3994_v11  ;;  %v560_v14 = vsub.f32 %v3989_v8, %v3994_v11  ;;  %v4004_v15 = vsub.f32 %v3991_v9, %v3997_v12  ;;  %v1041_v34 = vand.u32 4294901760, %v1040_v32  ;;  %2057 = vperm.xlu1 %3819, %v4033_v23  }
  0x14   : > { %484 = vmatpush1.msra.mxu1 %v3997_v12  ;;  %1993 = vrot.lane.b32.xlu0 %v3867_v1, %s3872_s15  ;;  %v1538_v62 = vand.u32 4294901760, %v1537_v56  ;;  %v1952_v56 = vlaneseq }
  0x15   : > { %v4007_v17 = vand.u32 4294901760, %v560_v14  ;;  %v4010_v18 = vand.u32 4294901760, %v4004_v15  ;;  %553 = vmatmul.mubr.f32.vlgmr.msra.gmra.mrb[0].mxu1 %v552_v16 }
  0x16   : > { %633 = vmatprep.mubr.f32.mxu1 %v3867_v1 }
  0x17   : > { %v562_v19 = vsub.f32 %v560_v14, %v4007_v17  ;;  %v568_v20 = vsub.f32 %v4004_v15, %v4010_v18  ;;  %3821 = vset.pattern.permute.xlu1 %v3874_v35  ;;  %v961_v35 = vld [vmem:[%s4271_s4] sm:$0xf] }
  0x18   : > { %2086 = vperm.xlu1 %3821, %v4033_v23   ;;  %2043 = vrot.lane.b32.xlu0 %v3867_v1, %s3876_s18 }
  0x19   : > { %v563_v21 = vand.u32 4294901760, %v562_v19  ;;  %v569_v22 = vand.u32 4294901760, %v568_v20 }
  0x1b   : > { %564 = vmatprep.subr.mxu1 %v563_v21 }
  0x1c   : > { %570 = vmatpush1.msra.mxu1 %v569_v22  ;;  %3822 = vset.pattern.permute.xlu1 %v3875_v36 }
  0x1d   : > { %643 = vmatprep.subr.mxu1 %v560_v14  ;;  %635 = vmatmul.mubr.f32.vlgmr.msra.gmra.mrb[0].mxu1 %v548_v5 }
  0x1e   : > { %646 = vmatpush1.msra.mxu1 %v4004_v15  ;;  %709 = vmatprep.mubr.f32.mxu1 %v3867_v1 }
  0x1f   : > { %719 = vmatprep.subr.mxu1 %v3994_v11  ;;  %2113 = vperm.xlu1 %3822, %v4033_v23  }
  0x23   : > { %2064 = vrot.lane.b32.xlu1 %v3867_v1, %s3877_s19 }
  0x25   : > { %712 = vmatmul.mubr.f32.vlgmr.msra.gmra.mrb[0].mxu1 %v549_v7 }
  0x26   : > { %721 = vmatpush1.msra.mxu1 %v3997_v12  ;;  %784 = vmatprep.mubr.f32.mxu1 %v3867_v1 }
  0x27   : > { %797 = vmatprep.subr.mxu1 %v4007_v17  ;;  %2103 = vrot.lane.b32.xlu1 %v3867_v1, %s3879_s20 }
  0x2d   : > { %788 = vmatmul.mubr.f32.vlgmr.msra.gmra.mrb[0].mxu1 %v550_v10 }
  0x2e   : > { %801 = vmatpush1.msra.mxu1 %v4010_v18  ;;  %864 = vmatprep.mubr.f32.mxu1 %v3867_v1 }
  0x2f   : > { %873 = vmatprep.subr.mxu1 %v3994_v11 }
  0x35   : > { %866 = vmatmul.mubr.f32.vlgmr.msra.gmra.mrb[0].mxu1 %v548_v5 }
  0x36   : > { %875 = vmatpush1.msra.mxu1 %v3997_v12  ;;  %938 = vmatprep.mubr.f32.mxu1 %v3867_v1 }
  0x37   : > { %971 = vmatprep.subr.mxu1 %v3994_v11 }
  0x3d   : > { %940 = vmatmul.mubr.f32.vlgmr.msra.gmra.mrb[0].mxu1 %v548_v5 }
  0x3e   : > { %973 = vmatpush1.msra.mxu1 %v3997_v12  ;;  %1036 = vmatprep.mubr.f32.mxu1 %v3867_v1 }
  0x3f   : > { %1053 = vmatprep.subr.mxu1 %v563_v21 }
  0x41   : > { %1042 = vmatmul.mubr.f32.vlgmr.msra.gmra.mrb[2].mxu1 %v1041_v34 }
  0x42   : > { %1059 = vmatpush1.msra.mxu1 %v569_v22  ;;  %1122 = vmatprep.mubr.f32.mxu1 %v3867_v1 }
  0x43   : > { %1132 = vmatprep.subr.mxu1 %v560_v14 }
  0x49   : > { %1124 = vmatmul.mubr.f32.vlgmr.msra.gmra.mrb[2].mxu1 %v1037_v28 }
  0x4a   : > { %1135 = vmatpush1.msra.mxu1 %v4004_v15  ;;  %1198 = vmatprep.mubr.f32.mxu1 %v3867_v1 }
  0x4b   : > { %1208 = vmatprep.subr.mxu1 %v3994_v11 }
  0x51   : > { %1201 = vmatmul.mubr.f32.vlgmr.msra.gmra.mrb[2].mxu1 %v1038_v29 }
  0x52   : > { %1210 = vmatpush1.msra.mxu1 %v3997_v12  ;;  %1273 = vmatprep.mubr.f32.mxu1 %v3867_v1 }
  0x53   : > { %1286 = vmatprep.subr.mxu1 %v4007_v17 }
  0x59   : > { %1277 = vmatmul.mubr.f32.vlgmr.msra.gmra.mrb[2].mxu1 %v1039_v31  ;;  %v2185_v31 = vld [vmem:[%s4275_s8] sm:$0xff] }
  0x5a   : > { %1290 = vmatpush1.msra.mxu1 %v4010_v18  ;;  %1353 = vmatprep.mubr.f32.mxu1 %v3867_v1 }
  0x5b   : > { %1362 = vmatprep.subr.mxu1 %v3994_v11  ;;  %v3878_v11 = vmov 6  }
  0x5c   : > { %3823 = vset.pattern.permute.xlu0 %v3878_v11 }
  0x5d   : > { %2134 = vperm.xlu0 %3823, %v4033_v23  }
  0x61   : > { %1355 = vmatmul.mubr.f32.vlgmr.msra.gmra.mrb[2].mxu1 %v1037_v28  ;;  %3824 = vset.pattern.permute.xlu0 %v3868_v3 }
  0x62   : > { %1364 = vmatpush1.msra.mxu1 %v3997_v12  ;;  %1427 = vmatprep.mubr.f32.mxu1 %v3867_v1  ;;  %v3880_v12 = vmov 8  }
  0x63   : > { %3825 = vset.pattern.permute.xlu1 %v3880_v12  ;;  %2009 = vperm.xlu0 %3824, %v4033_v23  }
  0x64   : > { %2178 = vperm.xlu1 %3825, %v4033_v23  }
  0x68   : > { %3826 = vset.pattern.permute.xlu1 %v3868_v3 }
  0x69   : > { %1429 = vmatmul.mubr.f32.vlgmr.msra.gmra.mrb[2].mxu1 %v1037_v28  ;;  %2124 = vrot.lane.b32.xlu1 %v3867_v1, %s3881_s22 }
  0x6a   : > { %2269 = vmatprep.mubr.f32.mxu1 %v3867_v1 }
  0x86   : > { %v475_v37 = vpop.permute.xlu0 %474 }
  0x88   : > { %v2018_v13 = vpop.permute.xlu1 %2017 }
  0x89   : > { %v2020_v14 = vmul.f32 0.0, %v2018_v13 }
  0x8a   : > { %v1454_v15 = vpop.permute.xlu0 %1453 }
  0x8b   : > { %2026 = vrot.lane.b32.xlu0 %v2020_v14, %s3882_s23 }
  0x8d   : > { %v2143_v32 = vpop.permute.xlu1 %2142 }
  0x8e   : > { %v2147_v34 = vmul.f32 0.0, %v2143_v32 }
 0x110   : > { %v941_v38 = vpop.f32.mrb[0].mxu1 }
 0x111   : > { %v3720_v39 = vadd.f32 %v941_v38, %v475_v37  ;;  %v943_v40 = vpop.f32.mrb[1].mxu1 }
 0x112   : > { %v3721_v41 = vadd.f32 %v943_v40, %v475_v37  ;;  %v3618_v40 = vld [vmem:[%s4280_s13] sm:$0xff] }
 0x113   : > { %v3708_v42 = vmul.f32 -1.442695, %v3720_v39 }
 0x114   : > { %v3709_v43 = vmul.f32 -1.442695, %v3721_v41 }
 0x115   : > { %3827 = vpow2.f32 %v3708_v42  ;;  %v4135_v42 = vpop.permute.xlu0 %2078 }
 0x116   : > { %3829 = vpow2.f32 %v3709_v43 }
 0x119   : > { %v1994_v45 = vpop.permute.xlu0 %1993 }
 0x11f   : > { %v3828_v46 = vpop.eup %3827 }
 0x120   : > { %v3830_v47 = vpop.eup %3829  ;;  %v952_v48 = vadd.f32 1.0, %v3828_v46 }
 0x121   : > { %v953_v49 = vadd.f32 1.0, %v3830_v47  ;;  %v2044_v47 = vpop.permute.xlu0 %2043 }
 0x122   : > { %3831 = vrcp.f32 %v952_v48 }
 0x123   : > { %3833 = vrcp.f32 %v953_v49 }
 0x125   : > { %v4141_v49 = vpop.permute.xlu0 %2134 }
 0x12c   : > { %v3832_v53 = vpop.eup %3831 }
 0x12d   : > { %v3834_v54 = vpop.eup %3833  ;;  %v958_v55 = vmul.f32 %v3832_v53, %v3720_v39  ;;  %v2194_v39 = vld [vmem:[%s4277_s10] sm:$0xf] }
 0x12e   : > { %v959_v57 = vmul.f32 %v3834_v54, %v3721_v41  ;;  %v2058_v41 = vpop.permute.xlu1 %2057 }
 0x12f   : > { %v1462_v58 = vsel %vm1460_vm2, %v958_v55, 0 }
 0x130   : > { %v1469_v59 = vand.u32 4294901760, %v1462_v58  ;;  %v1465_v60 = vsel %vm1460_vm2, %v959_v57, 0 }
 0x131   : > { %v1467_v61 = vand.u32 4294901760, %v1465_v60 }
 0x132   : > { %v1552_v63 = vsub.f32 %v1462_v58, %v1469_v59  ;;  %v4137_v43 = vpop.permute.xlu1 %2086 }
 0x133   : > { %v1546_v0 = vsub.f32 %v1465_v60, %v1467_v61  ;;  %1468 = vmatprep.subr.mxu0 %v1467_v61 }
 0x134   : > { %1470 = vmatpush1.msra.mxu0 %v1469_v59  ;;  %v1553_v2 = vand.u32 4294901760, %v1552_v63 }
 0x135   : > { %1539 = vmatmul.mubr.f32.vlgmr.msra.gmra.mrb[0].mxu0 %v1538_v62  ;;  %v1547_v4 = vand.u32 4294901760, %v1546_v0 }
 0x136   : > { %v1554_v5 = vsub.f32 %v1552_v63, %v1553_v2  ;;  %1619 = vmatprep.mubr.f32.mxu0 %v3867_v1  ;;  %v4139_v44 = vpop.permute.xlu1 %2113 }
 0x137   : > { %v1548_v6 = vsub.f32 %v1546_v0, %v1547_v4 }
 0x138   : > { %v1555_v10 = vand.u32 4294901760, %v1554_v5 }
 0x139   : > { %v1549_v7 = vand.u32 4294901760, %v1548_v6 }
 0x13a   : > { %v2065_v46 = vpop.permute.xlu1 %2064 }
 0x13b   : > { %1550 = vmatprep.subr.mxu0 %v1549_v7 }
 0x13c   : > { %1556 = vmatpush1.msra.mxu0 %v1555_v10  ;;  %v4125_v37 = vpop.f32.mrb[2].mxu1 }
 0x13d   : > { %1621 = vmatmul.mubr.f32.vlgmr.msra.gmra.mrb[0].mxu0 %v1534_v50  ;;  %1629 = vmatprep.subr.mxu0 %v1546_v0  ;;  %v4127_v38 = vpop.f32.mrb[3].mxu1 }
 0x13e   : > { %1632 = vmatpush1.msra.mxu0 %v1552_v63  ;;  %1695 = vmatprep.mubr.f32.mxu0 %v3867_v1  ;;  %v2104_v48 = vpop.permute.xlu1 %2103 }
 0x13f   : > { %1705 = vmatprep.subr.mxu0 %v1467_v61 }
 0x145   : > { %1698 = vmatmul.mubr.f32.vlgmr.msra.gmra.mrb[0].mxu0 %v1535_v51  ;;  %v2010_v51 = vpop.permute.xlu0 %2009 }
 0x146   : > { %1707 = vmatpush1.msra.mxu0 %v1469_v59  ;;  %1770 = vmatprep.mubr.f32.mxu0 %v3867_v1 }
 0x147   : > { %1783 = vmatprep.subr.mxu0 %v1547_v4 }
 0x149   : > { %v2027_v53 = vpop.permute.xlu0 %2026 }
 0x14d   : > { %1774 = vmatmul.mubr.f32.vlgmr.msra.gmra.mrb[0].mxu0 %v1536_v52 }
 0x14e   : > { %1787 = vmatpush1.msra.mxu0 %v1553_v2  ;;  %1850 = vmatprep.mubr.f32.mxu0 %v3867_v1 }
 0x14f   : > { %1859 = vmatprep.subr.mxu0 %v1467_v61 }
 0x155   : > { %1852 = vmatmul.mubr.f32.vlgmr.msra.gmra.mrb[0].mxu0 %v1534_v50 }
 0x156   : > { %1861 = vmatpush1.msra.mxu0 %v1469_v59  ;;  %1924 = vmatprep.mubr.f32.mxu0 %v3867_v1  ;;  %v1953_v59 = vand.u32 127, %v1952_v56 }
 0x158   : > { %v1954_v62 = vadd.s32 128, %v1953_v59  ;;  %v1959_v6 = vand.u32 15, %v1953_v59 }
 0x15a   : > { %v1966_v2 = vand.u32 15, %v1954_v62  ;;  %vm4153_vm7 = vcmp.gt.s32.totalorder %v1959_v6, 0  ;;  %vm4166_vm10 = vcmp.lt.s32.totalorder %v1959_v6, 15 }
 0x15c   : > { %vm4147_vm4 = vcmp.gt.s32.totalorder %v1966_v2, 0  ;;  %vm4157_vm8 = vcmp.lt.s32.totalorder %v1966_v2, 15 }
 0x15d   : > { %1926 = vmatmul.mubr.f32.vlgmr.msra.gmra.mrb[0].mxu0 %v1534_v50  ;;  %v4143_v50 = vpop.permute.xlu1 %2178 }
 0x15e   : > { %2745 = vmatprep.mubr.f32.mxu0 %v3867_v1 }
 0x161   : > { %v2125_v52 = vpop.permute.xlu1 %2124 }
 0x230   : > { %v1927_v16 = vpop.f32.mrb[0].mxu0 }
 0x231   : > { %v3724_v17 = vadd.f32 %v1927_v16, %v1454_v15  ;;  %v1929_v18 = vpop.f32.mrb[1].mxu0 }
 0x232   : > { %v3725_v19 = vadd.f32 %v1929_v18, %v1454_v15 }
 0x233   : > { %v3712_v20 = vmul.f32 -1.442695, %v3724_v17 }
 0x234   : > { %v3713_v21 = vmul.f32 -1.442695, %v3725_v19 }
 0x235   : > { %3835 = vpow2.f32 %v3712_v20 }
 0x236   : > { %3837 = vpow2.f32 %v3713_v21 }
 0x23f   : > { %v3836_v22 = vpop.eup %3835 }
 0x240   : > { %v1938_v3 = vadd.f32 1.0, %v3836_v22  ;;  %v3838_v23 = vpop.eup %3837 }
 0x241   : > { %v1939_v24 = vadd.f32 1.0, %v3838_v23 }
 0x242   : > { %3839 = vrcp.f32 %v1938_v3 }
 0x243   : > { %3841 = vrcp.f32 %v1939_v24 }
 0x24c   : > { %v3840_v25 = vpop.eup %3839 }
 0x24d   : > { %v4086_v26 = vmul.f32 %v3840_v25, %v3724_v17  ;;  %v3842_v27 = vpop.eup %3841 }
 0x24e   : > { %v4096_v28 = vmul.f32 %v3842_v27, %v3725_v19 }
 0x24f   : > { %2045 = vrot.lane.b32.xlu0 %v4086_v26, %s3876_s18  ;;  %1995 = vrot.lane.b32.xlu1 %v4086_v26, %s3872_s15  ;;  %v2021_v29 = vmul.f32 %v2018_v13, %v4086_v26  ;;  %v2145_v36 = vmul.f32 %v2143_v32, %v4086_v26 }
 0x250   : > { %v2022_v30 = vmul.f32 %v2018_v13, %v4096_v28  ;;  %v2146_v33 = vmul.f32 %v2143_v32, %v4096_v28 }
 0x253   : > { %2099 = vrot.lane.b32.xlu0 %v4086_v26, %s3879_s20  ;;  %2066 = vrot.lane.b32.xlu1 %v4086_v26, %s3877_s19 }
 0x257   : > { %2120 = vrot.lane.b32.xlu0 %v4086_v26, %s3881_s22  ;;  %1997 = vrot.lane.b32.xlu1 %v4096_v28, %s3872_s15  ;;  %s467_s15 = scalar_lea.vmem %s4281_s14, %s3718_s21 }
 0x25b   : > { %2068 = vrot.lane.b32.xlu0 %v4096_v28, %s3877_s19  ;;  %2047 = vrot.lane.b32.xlu1 %v4096_v28, %s3876_s18 }
 0x25f   : > { %2122 = vrot.lane.b32.xlu0 %v4096_v28, %s3881_s22  ;;  %2101 = vrot.lane.b32.xlu1 %v4096_v28, %s3879_s20 }
 0x263   : > { %2030 = vrot.lane.b32.xlu1 %v2022_v30, %s3882_s23  ;;  %2028 = vrot.lane.b32.xlu0 %v2021_v29, %s3882_s23 }
 0x267   : > { %2188 = vperm.xlu1 %3826, %v2185_v31   ;;  %2166 = vrot.lane.b32.xlu0 %v4096_v28, %s3883_s26 }
 0x26b   : > { %2168 = vrot.lane.b32.xlu1 %v3867_v1, %s3883_s26  ;;  %2153 = vrot.lane.b32.xlu0 %v2146_v33, %s3884_s27 }
 0x26f   : > { %2155 = vrot.lane.b32.xlu1 %v2147_v34, %s3884_s27  ;;  %2164 = vrot.lane.b32.xlu0 %v4086_v26, %s3883_s26 }
 0x273   : > { %2151 = vrot.lane.b32.xlu1 %v2145_v36, %s3884_s27  ;;  %964 = vperm.xlu0 %3824, %v961_v35  }
 0x277   : > { %2197 = vperm.xlu1 %3826, %v2194_v39  }
 0x27b   : > { %3621 = vperm.xlu1 %3826, %v3618_v40  }
 0x2c1   : > { %v2046_v54 = vpop.permute.xlu0 %2045  ;;  %v1996_v55 = vpop.permute.xlu1 %1995 }
 0x2c2   : > { %v2000_v15 = vsel %vm1999_vm3, %v1994_v45, %v1996_v55  ;;  %v2050_v3 = vsel %vm2049_vm6, %v2044_v47, %v2046_v54 }
 0x2c3   : > { %v2004_v20 = vsel %vm4153_vm7, %v2000_v15, 0.0  ;;  %v2054_v30 = vsel %vm4166_vm10, %v2050_v3, 0.0 }
 0x2c4   : > { %v2012_v27 = vmul.f32 %v2010_v51, %v2004_v20  ;;  %v2060_v36 = vmul.f32 %v2058_v41, %v2054_v30 }
 0x2c5   : > { %v2100_v57 = vpop.permute.xlu0 %2099  ;;  %v2067_v58 = vpop.permute.xlu1 %2066 }
 0x2c6   : > { %v2071_v32 = vsel %vm2070_vm9, %v2065_v46, %v2067_v58  ;;  %v2090_v46 = vmul.f32 %v4137_v43, %v4096_v28 }
 0x2c7   : > { %v2075_v40 = vsel %vm4153_vm7, %v2071_v32, 0.0 }
 0x2c9   : > { %v4145_v60 = vpop.permute.xlu0 %2120  ;;  %v1998_v61 = vpop.permute.xlu1 %1997 }
 0x2ca   : > { %v2001_v10 = vsel %vm1999_vm3, %v1996_v55, %v1998_v61 }
 0x2cb   : > { %v2005_v11 = vsel %vm4147_vm4, %v2001_v10, 0.0 }
 0x2cc   : > { %v2013_v19 = vmul.f32 %v2010_v51, %v2005_v11 }
 0x2cd   : > { %v2069_v63 = vpop.permute.xlu0 %2068  ;;  %v2048_v0 = vpop.permute.xlu1 %2047 }
 0x2ce   : > { %v2051_v17 = vsel %vm2049_vm6, %v2046_v54, %v2048_v0  ;;  %v2072_v23 = vsel %vm2070_vm9, %v2067_v58, %v2069_v63  ;;  %v2081_v54 = vmul.f32 %v4135_v42, %v2075_v40  ;;  %v2089_v63 = vmul.f32 %v4137_v43, %v4086_v26 }
 0x2cf   : > { %v2055_v21 = vsel %vm4157_vm8, %v2051_v17, 0.0  ;;  %v2076_v31 = vsel %vm4147_vm4, %v2072_v23, 0.0 }
 0x2d0   : > { %v2061_v29 = vmul.f32 %v2058_v41, %v2055_v21  ;;  %v2082_v39 = vmul.f32 %v4135_v42, %v2076_v31 }
 0x2d1   : > { %v2123_v4 = vpop.permute.xlu0 %2122  ;;  %v2102_v5 = vpop.permute.xlu1 %2101 }
 0x2d2   : > { %v2107_v45 = vsel %vm2105_vm11, %v2102_v5, %v2104_v48  ;;  %v2128_v48 = vsel %vm2126_vm12, %v2123_v4, %v2125_v52  ;;  %v2106_v58 = vsel %vm2105_vm11, %v2100_v57, %v2102_v5  ;;  %v2127_v52 = vsel %vm2126_vm12, %v4145_v60, %v2123_v4 }
 0x2d3   : > { %v2111_v41 = vsel %vm4157_vm8, %v2107_v45, 0.0  ;;  %v2132_v42 = vsel %vm4147_vm4, %v2128_v48, 0.0  ;;  %v2110_v0 = vsel %vm4166_vm10, %v2106_v58, 0.0  ;;  %v2131_v7 = vsel %vm4153_vm7, %v2127_v52, 0.0 }
 0x2d4   : > { %v2117_v28 = vmul.f32 %v4139_v44, %v2111_v41  ;;  %v2138_v26 = vmul.f32 %v4141_v49, %v2132_v42  ;;  %v2116_v43 = vmul.f32 %v4139_v44, %v2110_v0 }
 0x2d5   : > { %v2031_v12 = vpop.permute.xlu1 %2030  ;;  %v2029_v13 = vpop.permute.xlu0 %2028 }
 0x2d6   : > { %v2034_v18 = vsel %vm2032_vm5, %v2029_v13, %v2031_v12  ;;  %v2033_v25 = vsel %vm2032_vm5, %v2027_v53, %v2029_v13  ;;  %v2193_v53 = vld [vmem:[%s4276_s9] sm:$0xf] }
 0x2d7   : > { %v2038_v24 = vadd.f32 %v2034_v18, %v2013_v19  ;;  %v2037_v33 = vadd.f32 %v2033_v25, %v2012_v27  ;;  %v2201_v56 = vsel %vm477_vm0, %v2193_v53, 0  ;;  %v2137_v19 = vmul.f32 %v4141_v49, %v2131_v7 }
 0x2d8   : > { %v4197_v2 = vand.u32 4294901760, %v2201_v56 }
 0x2d9   : > { %v2063_v34 = vadd.f32 %v2061_v29, %v2038_v24  ;;  %v2167_v35 = vpop.permute.xlu0 %2166  ;;  %v2062_v47 = vadd.f32 %v2060_v36, %v2037_v33 }
 0x2da   : > { %v4208_v13 = vsub.f32 %v2201_v56, %v4197_v2 }
 0x2db   : > { %v2084_v51 = vadd.f32 %v2082_v39, %v2063_v34  ;;  %v2083_v59 = vadd.f32 %v2081_v54, %v2062_v47  ;;  %v2669_v47 = vld [vmem:[%s4279_s12] sm:$0xff] }
 0x2dc   : > { %v2272_v16 = vand.u32 4294901760, %v4208_v13  ;;  %v2671_v54 = vsel %vm1456_vm1, %v2669_v47, 0 }
 0x2dd   : > { %v2154_v55 = vpop.permute.xlu0 %2153  ;;  %v2092_v62 = vadd.f32 %v2090_v46, %v2084_v51  ;;  %v2091_v6 = vadd.f32 %v2089_v63, %v2083_v59  ;;  %v2746_v59 = vand.u32 4294901760, %v2671_v54 }
 0x2de   : > { %v2273_v22 = vsub.f32 %v4208_v13, %v2272_v16 }
 0x2df   : > { %v2119_v5 = vadd.f32 %v2117_v28, %v2092_v62  ;;  %v2118_v17 = vadd.f32 %v2116_v43, %v2091_v6 }
 0x2e1   : > { %v2165_v10 = vpop.permute.xlu0 %2164  ;;  %v2140_v15 = vadd.f32 %v2138_v26, %v2119_v5  ;;  %v2139_v23 = vadd.f32 %v2137_v19, %v2118_v17 }
 0x2e2   : > { %v2171_v60 = vsel %vm2170_vm13, %v2165_v10, %v2167_v35 }
 0x2e3   : > { %v2175_v14 = vsel %vm4166_vm10, %v2171_v60, 0.0 }
 0x2e4   : > { %v2181_v49 = vmul.f32 %v4143_v50, %v2175_v14 }
 0x2e6   : > { %v2189_v61 = vpop.permute.xlu1 %2188 }
 0x2ea   : > { %v2169_v57 = vpop.permute.xlu1 %2168 }
 0x2eb   : > { %v2172_v11 = vsel %vm2170_vm13, %v2167_v35, %v2169_v57 }
 0x2ec   : > { %v2176_v12 = vsel %vm4157_vm8, %v2172_v11, 0.0 }
 0x2ed   : > { %v2182_v44 = vmul.f32 %v4143_v50, %v2176_v12 }
 0x2ee   : > { %v2156_v4 = vpop.permute.xlu1 %2155 }
 0x2ef   : > { %v2159_v18 = vsel %vm2157_vm14, %v2154_v55, %v2156_v4 }
 0x2f0   : > { %v2163_v20 = vadd.f32 %v2159_v18, %v2140_v15 }
 0x2f2   : > { %v2184_v21 = vadd.f32 %v2182_v44, %v2163_v20  ;;  %v2152_v3 = vpop.permute.xlu1 %2151  ;;  %v965_v24 = vpop.permute.xlu0 %964 }
 0x2f3   : > { %v2158_v25 = vsel %vm2157_vm14, %v2152_v3, %v2154_v55  ;;  %v3722_v27 = vadd.f32 %v4125_v37, %v965_v24  ;;  %v3723_v29 = vadd.f32 %v4127_v38, %v965_v24  ;;  %v2274_v37 = vand.u32 4294901760, %v2273_v22 }
 0x2f4   : > { %v2192_v30 = vadd.f32 %v2189_v61, %v2184_v21  ;;  %v2162_v31 = vadd.f32 %v2158_v25, %v2139_v23 }
 0x2f5   : > { %v3710_v32 = vmul.f32 -1.442695, %v3722_v27  ;;  %v3711_v33 = vmul.f32 -1.442695, %v3723_v29 }
 0x2f6   : > { %v2183_v34 = vadd.f32 %v2181_v49, %v2162_v31  ;;  %v2203_v35 = vand.u32 4294901760, %v2192_v30  ;;  %v2198_v20 = vpop.permute.xlu1 %2197 }
 0x2f7   : > { %3843 = vpow2.f32 %v3710_v32 }
 0x2f8   : > { %v2191_v36 = vadd.f32 %v2189_v61, %v2183_v34  ;;  %3845 = vpow2.f32 %v3711_v33  ;;  %2204 = vmatprep.subr.mxu1 %v2203_v35  ;;  %v2282_v39 = vsub.f32 %v2192_v30, %v2203_v35  ;;  %v2747_v61 = vsub.f32 %v2671_v54, %v2746_v59 }
 0x2fa   : > { %v2205_v40 = vand.u32 4294901760, %v2191_v36  ;;  %v2283_v38 = vand.u32 4294901760, %v2282_v39  ;;  %v2748_v62 = vand.u32 4294901760, %v2747_v61 }
 0x2fc   : > { %2206 = vmatpush1.msra.mxu1 %v2205_v40  ;;  %v2284_v50 = vsub.f32 %v2282_v39, %v2283_v38  ;;  %v2288_v45 = vsub.f32 %v2191_v36, %v2205_v40  ;;  %v2749_v0 = vsub.f32 %v2747_v61, %v2748_v62 }
 0x2fd   : > { %2275 = vmatmul.mubr.f32.vlgmr.msra.gmra.mrb[4].mxu1 %v2274_v37 }
 0x2fe   : > { %v2285_v51 = vand.u32 4294901760, %v2284_v50  ;;  %v2289_v53 = vand.u32 4294901760, %v2288_v45  ;;  %2355 = vmatprep.mubr.f32.mxu1 %v3867_v1  ;;  %v2750_v11 = vand.u32 4294901760, %v2749_v0 }
 0x300   : > { %2286 = vmatprep.subr.mxu1 %v2285_v51  ;;  %v2290_v46 = vsub.f32 %v2288_v45, %v2289_v53 }
 0x301   : > { %v3844_v41 = vpop.eup %3843 }
 0x302   : > { %v3846_v55 = vpop.eup %3845  ;;  %v1441_v56 = vadd.f32 1.0, %v3844_v41  ;;  %v2291_v48 = vand.u32 4294901760, %v2290_v46 }
 0x303   : > { %v1442_v58 = vadd.f32 1.0, %v3846_v55 }
 0x304   : > { %3847 = vrcp.f32 %v1441_v56  ;;  %2292 = vmatpush1.msra.mxu1 %v2291_v48 }
 0x305   : > { %3849 = vrcp.f32 %v1442_v58  ;;  %2357 = vmatmul.mubr.f32.vlgmr.msra.gmra.mrb[4].mxu1 %v4197_v2  ;;  %2365 = vmatprep.subr.mxu1 %v2282_v39  ;;  %v3622_v39 = vpop.permute.xlu1 %3621 }
 0x306   : > { %2368 = vmatpush1.msra.mxu1 %v2288_v45  ;;  %2431 = vmatprep.mubr.f32.mxu1 %v3867_v1 }
 0x307   : > { %2441 = vmatprep.subr.mxu1 %v2203_v35 }
 0x30d   : > { %2434 = vmatmul.mubr.f32.vlgmr.msra.gmra.mrb[4].mxu1 %v4208_v13 }
 0x30e   : > { %v3848_v63 = vpop.eup %3847  ;;  %2443 = vmatpush1.msra.mxu1 %v2205_v40  ;;  %2506 = vmatprep.mubr.f32.mxu1 %v3867_v1 }
 0x30f   : > { %v3850_v28 = vpop.eup %3849  ;;  %v1447_v42 = vmul.f32 %v3848_v63, %v3722_v27  ;;  %2519 = vmatprep.subr.mxu1 %v2283_v38 }
 0x310   : > { %v1448_v52 = vmul.f32 %v3850_v28, %v3723_v29 }
 0x311   : > { %v2674_v57 = vsel %vm1460_vm2, %v1447_v42, 0 }
 0x312   : > { %v2677_v5 = vsel %vm1460_vm2, %v1448_v52, 0  ;;  %v2681_v6 = vand.u32 4294901760, %v2674_v57 }
 0x313   : > { %v2679_v10 = vand.u32 4294901760, %v2677_v5 }
 0x314   : > { %v2764_v26 = vsub.f32 %v2674_v57, %v2681_v6 }
 0x315   : > { %v2758_v43 = vsub.f32 %v2677_v5, %v2679_v10  ;;  %2680 = vmatprep.subr.mxu0 %v2679_v10  ;;  %2510 = vmatmul.mubr.f32.vlgmr.msra.gmra.mrb[4].mxu1 %v2272_v16 }
 0x316   : > { %2523 = vmatpush1.msra.mxu1 %v2289_v53  ;;  %2682 = vmatpush1.msra.mxu0 %v2681_v6  ;;  %v2765_v7 = vand.u32 4294901760, %v2764_v26 }
 0x317   : > { %2595 = vmatprep.subr.mxu1 %v2203_v35  ;;  %2751 = vmatmul.mubr.f32.vlgmr.msra.gmra.mrb[2].mxu0 %v2750_v11  ;;  %v2759_v12 = vand.u32 4294901760, %v2758_v43 }
 0x318   : > { %2586 = vmatprep.mubr.f32.mxu1 %v3867_v1  ;;  %v2766_v60 = vsub.f32 %v2764_v26, %v2765_v7  ;;  %2831 = vmatprep.mubr.f32.mxu0 %v3867_v1 }
 0x319   : > { %v2760_v4 = vsub.f32 %v2758_v43, %v2759_v12 }
 0x31a   : > { %v2767_v15 = vand.u32 4294901760, %v2766_v60 }
 0x31b   : > { %v2761_v17 = vand.u32 4294901760, %v2760_v4 }
 0x31d   : > { %2762 = vmatprep.subr.mxu0 %v2761_v17  ;;  %2588 = vmatmul.mubr.f32.vlgmr.msra.gmra.mrb[4].mxu1 %v4197_v2 }
 0x31e   : > { %2597 = vmatpush1.msra.mxu1 %v2205_v40  ;;  %2768 = vmatpush1.msra.mxu0 %v2767_v15 }
 0x31f   : > { %2833 = vmatmul.mubr.f32.vlgmr.msra.gmra.mrb[2].mxu0 %v2746_v59  ;;  %2841 = vmatprep.subr.mxu0 %v2758_v43 }
 0x320   : > { %2844 = vmatpush1.msra.mxu0 %v2764_v26  ;;  %2660 = vmatprep.mubr.f32.mxu1 %v3867_v1 }
 0x321   : > { %2917 = vmatprep.subr.mxu0 %v2679_v10  ;;  %2907 = vmatprep.mubr.f32.mxu0 %v3867_v1 }
 0x325   : > { %2662 = vmatmul.mubr.f32.vlgmr.msra.gmra.mrb[4].mxu1 %v4197_v2  ;;  %v2668_v2 = vld [vmem:[%s4278_s11] sm:$0xff] }
 0x326   : > { %v3145_v13 = vsel %vm1456_vm1, %v2668_v2, 0 }
 0x327   : > { %2910 = vmatmul.mubr.f32.vlgmr.msra.gmra.mrb[2].mxu0 %v2747_v61  ;;  %v3220_v18 = vand.u32 4294901760, %v3145_v13 }
 0x328   : > { %2919 = vmatpush1.msra.mxu0 %v2681_v6  ;;  %2982 = vmatprep.mubr.f32.mxu0 %v3867_v1 }
 0x329   : > { %2995 = vmatprep.subr.mxu0 %v2759_v12  ;;  %v3221_v19 = vsub.f32 %v3145_v13, %v3220_v18 }
 0x32b   : > { %v3222_v44 = vand.u32 4294901760, %v3221_v19 }
 0x32d   : > { %v3223_v3 = vsub.f32 %v3221_v19, %v3222_v44 }
 0x32f   : > { %2986 = vmatmul.mubr.f32.vlgmr.msra.gmra.mrb[2].mxu0 %v2748_v62  ;;  %v3224_v49 = vand.u32 4294901760, %v3223_v3 }
 0x330   : > { %2999 = vmatpush1.msra.mxu0 %v2765_v7  ;;  %3062 = vmatprep.mubr.f32.mxu0 %v3867_v1 }
 0x331   : > { %3071 = vmatprep.subr.mxu0 %v2679_v10 }
 0x337   : > { %3064 = vmatmul.mubr.f32.vlgmr.msra.gmra.mrb[2].mxu0 %v2746_v59 }
 0x338   : > { %3073 = vmatpush1.msra.mxu0 %v2681_v6  ;;  %3136 = vmatprep.mubr.f32.mxu0 %v3867_v1 }
 0x33f   : > { %3138 = vmatmul.mubr.f32.vlgmr.msra.gmra.mrb[2].mxu0 %v2746_v59 }
 0x340   : > { %3219 = vmatprep.mubr.f32.mxu0 %v3867_v1 }
 0x3f8   : > { %v2663_v14 = vpop.f32.mrb[4].mxu1 }
 0x3f9   : > { %v3726_v16 = vadd.f32 %v2663_v14, %v2198_v20  ;;  %v2665_v21 = vpop.f32.mrb[5].mxu1 }
 0x3fa   : > { %v3727_v23 = vadd.f32 %v2665_v21, %v2198_v20 }
 0x3fb   : > { %v3148_v24 = vsel %vm1460_vm2, %v3726_v16, 0 }
 0x3fc   : > { %v3155_v25 = vand.u32 4294901760, %v3148_v24  ;;  %v3151_v27 = vsel %vm1460_vm2, %v3727_v23, 0 }
 0x3fd   : > { %v3153_v29 = vand.u32 4294901760, %v3151_v27 }
 0x3fe   : > { %v3238_v30 = vsub.f32 %v3148_v24, %v3155_v25 }
 0x3ff   : > { %v3232_v31 = vsub.f32 %v3151_v27, %v3153_v29  ;;  %3154 = vmatprep.subr.mxu0 %v3153_v29 }
 0x400   : > { %v3239_v32 = vand.u32 4294901760, %v3238_v30  ;;  %3156 = vmatpush1.msra.mxu0 %v3155_v25 }
 0x401   : > { %3225 = vmatmul.mubr.f32.vlgmr.msra.gmra.mrb[2].mxu0 %v3224_v49  ;;  %v3233_v33 = vand.u32 4294901760, %v3232_v31 }
 0x402   : > { %v3240_v22 = vsub.f32 %v3238_v30, %v3239_v32  ;;  %3305 = vmatprep.mubr.f32.mxu0 %v3867_v1 }
 0x403   : > { %v3234_v34 = vsub.f32 %v3232_v31, %v3233_v33 }
 0x404   : > { %v3241_v36 = vand.u32 4294901760, %v3240_v22 }
 0x405   : > { %v3235_v35 = vand.u32 4294901760, %v3234_v34 }
 0x407   : > { %3236 = vmatprep.subr.mxu0 %v3235_v35 }
 0x408   : > { %3242 = vmatpush1.msra.mxu0 %v3241_v36 }
 0x409   : > { %3307 = vmatmul.mubr.f32.vlgmr.msra.gmra.mrb[2].mxu0 %v3220_v18  ;;  %3315 = vmatprep.subr.mxu0 %v3232_v31 }
 0x40a   : > { %3318 = vmatpush1.msra.mxu0 %v3238_v30  ;;  %3381 = vmatprep.mubr.f32.mxu0 %v3867_v1 }
 0x40b   : > { %3391 = vmatprep.subr.mxu0 %v3153_v29 }
 0x411   : > { %3384 = vmatmul.mubr.f32.vlgmr.msra.gmra.mrb[2].mxu0 %v3221_v19 }
 0x412   : > { %3393 = vmatpush1.msra.mxu0 %v3155_v25  ;;  %3456 = vmatprep.mubr.f32.mxu0 %v3867_v1 }
 0x413   : > { %3469 = vmatprep.subr.mxu0 %v3233_v33 }
 0x419   : > { %3460 = vmatmul.mubr.f32.vlgmr.msra.gmra.mrb[2].mxu0 %v3222_v44 }
 0x41a   : > { %3473 = vmatpush1.msra.mxu0 %v3239_v32  ;;  %3536 = vmatprep.mubr.f32.mxu0 %v3867_v1 }
 0x41b   : > { %3545 = vmatprep.subr.mxu0 %v3153_v29 }
 0x421   : > { %3538 = vmatmul.mubr.f32.vlgmr.msra.gmra.mrb[2].mxu0 %v3220_v18 }
 0x422   : > { %3547 = vmatpush1.msra.mxu0 %v3155_v25  ;;  %3610 = vmatprep.mubr.f32.mxu0 %v3867_v1 }
 0x429   : > { %3612 = vmatmul.mubr.f32.vlgmr.msra.gmra.mrb[2].mxu0 %v3220_v18 }
 0x4fc   : > { %v3613_v37 = vpop.f32.mrb[2].mxu0 }
 0x4fd   : > { %v3624_v40 = vadd.f32 %v3622_v39, %v3613_v37  ;;  %v3615_v38 = vpop.f32.mrb[3].mxu0 }
 0x4fe   : > { %v3625_v50 = vadd.f32 %v3622_v39, %v3615_v38 }
 0x4ff   : > { %v3714_v45 = vmul.f32 -1.442695, %v3624_v40 }
 0x500   : > { %v3715_v47 = vmul.f32 -1.442695, %v3625_v50 }
 0x501   : > { %3851 = vpow2.f32 %v3714_v45 }
 0x502   : > { %3853 = vpow2.f32 %v3715_v47 }
 0x50b   : > { %v3852_v51 = vpop.eup %3851 }
 0x50c   : > { %v3854_v53 = vpop.eup %3853  ;;  %v3632_v46 = vadd.f32 1.0, %v3852_v51 }
 0x50d   : > { %v3633_v54 = vadd.f32 1.0, %v3854_v53 }
 0x50e   : > { %3855 = vrcp.f32 %v3632_v46 }
 0x50f   : > { %3857 = vrcp.f32 %v3633_v54 }
 0x518   : > { %v3856_v41 = vpop.eup %3855 }
 0x519   : > { %v3858_v55 = vpop.eup %3857  ;;  %v3638_v1 = vmul.f32 %v3856_v41, %v3624_v40 }
 0x51a   : > { %v3639_v56 = vmul.f32 %v3858_v55, %v3625_v50 }
 0x51b   : > { %v3640_v48 = vadd.f32 %v3638_v1, %v3991_v9 }
 0x51c   : > { %v3641_v58 = vadd.f32 %v3639_v56, %v3989_v8 }
 0x51d   : > { %3642 = vst [vmem:[%s467_s15] sm:$0xff] %v3640_v48 }
 0x51e   : > { %3643 = vst [vmem:[%s467_s15 + $0x8] sm:$0xff] %v3641_v58 }
 0x51f PF: > { %s24_s29 = sadd.s32 1, %s3865_s29  }
 0x520   : > { %p21_p4 = scmp.ge.s32.totalorder %s24_s29, 4  }
 0x522   :  { %23 = sbr.rel (!%p21_p4) target bundleno = 1 (0x1), region = 106 }

</bundles_post_ra>
